<compile_context>
chip_gen: v6e
topology: v6e:2x2x1
jax: 0.10.0
libtpu: 0.0.40
codegen_flags: <defaults>
</compile_context>

<pallas_src>
import jax
import jax.numpy as jnp
import numpy as np
from jax import lax
from jax.experimental import pallas as pl
from jax.experimental.pallas import tpu as pltpu


# ---------------------------------------------------------------------------
# Kernel
# ---------------------------------------------------------------------------
def _weight_drop_rnn_kernel(x_ref, wih_t_ref, whh_t_ref, b_ref, o_ref, h_scr):
    """One grid step = one (batch block, time block) tile of the recurrence."""
    tb = pl.program_id(1)                  # time-block index (inner, 'arbitrary')

    @pl.when(tb == 0)
    def _init():
        # PyTorch default h0 = 0, re-initialized per batch block.
        h_scr[...] = jnp.zeros_like(h_scr)

    t_blk, b_sz, in_sz = x_ref.shape
    h_sz = h_scr.shape[1]

    # Hoisted, time-independent input projection for the whole time block:
    # one well-shaped (t_blk*b_sz, IN) @ (IN, H) MXU matmul with b_ih + b_hh
    # folded in, staged directly into the f32 output block (no xw scratch).
    x_flat = x_ref[...].reshape(t_blk * b_sz, in_sz)
    xw = jnp.dot(x_flat, wih_t_ref[...], preferred_element_type=jnp.float32)
    o_ref[...] = (xw + b_ref[...]).reshape(t_blk, b_sz, h_sz)

    # Recurrence: only h_{t-1} @ W_hh_drop^T remains per timestep.  MXU gets
    # low-precision operands (mxu_dtype of the weights); accumulate + tanh in
    # f32.  Bounded unroll: enough LLO visibility without vreg spills.
    def step(i, h_prev):
        rec = jnp.dot(h_prev.astype(whh_t_ref.dtype), whh_t_ref[...],
                      preferred_element_type=jnp.float32)
        h_new = jnp.tanh(o_ref[i] + rec)
        o_ref[i] = h_new
        return h_new

    h_scr[...] = lax.fori_loop(0, t_blk, step, h_scr[...],
                               unroll=min(t_blk, 4))


# ---------------------------------------------------------------------------
# Host-side helpers
# ---------------------------------------------------------------------------
def _round_up(n, m):
    return ((n + m - 1) // m) * m


def _pad_to(a, shape):
    widths = [(0, t - s) for s, t in zip(a.shape, shape)]
    return a if all(w == (0, 0) for w in widths) else jnp.pad(a, widths)


def _weight_drop_mask(key, h_sz, dropout, variational, training):
    """Pre-scaled keep mask in raw_w layout, mirroring WeightDrop._setweights().

    non-variational: F.dropout(raw_w, p, training=self.training)
    variational:     one mask per row of raw_w, training=True always.
    """
    dropout = float(dropout)
    applies = dropout > 0.0 and (variational or training)
    if not applies:
        return jnp.ones((h_sz, h_sz), jnp.float32)
    if dropout >= 1.0:
        return jnp.zeros((h_sz, h_sz), jnp.float32)   # F.dropout(p=1) -> zeros
    keep_p = 1.0 - dropout
    if variational:
        keep = jax.random.bernoulli(key, keep_p, (h_sz, 1)).astype(jnp.float32)
        return jnp.broadcast_to(keep / keep_p, (h_sz, h_sz))
    keep = jax.random.bernoulli(key, keep_p, (h_sz, h_sz)).astype(jnp.float32)
    return keep / keep_p


def _pick_t_blk(T, b_blk):
    """>=4 grid steps for DMA/compute overlap, but >= ~512 rows per block to
    amortize the ~0.35us per-grid-step overhead.  Sweep per chip in prod."""
    if T <= 4:
        return T
    t = max(1, min(T // 4, -(-512 // b_blk)))
    while T % t:                            # round down to a divisor of T
        t -= 1
    return t


# ---------------------------------------------------------------------------
# Wrapper: forward of WeightDrop(nn.RNN(IN, H), ['weight_hh_l0'], dropout, var)
# ---------------------------------------------------------------------------
def weight_drop_rnn(x, w_ih, w_hh_raw, b_ih, b_hh, drop_key, *,
                    dropout=0.5, variational=False, training=True,
                    t_blk=None, b_blk=None, mxu_dtype=jnp.bfloat16):
    T, B, IN = x.shape
    H = w_ih.shape[0]
    assert w_ih.shape == (H, IN) and w_hh_raw.shape == (H, H)

    # --- _setweights(), once per forward, on the host ---------------------
    # Applying the mask here (instead of shipping an (H,H) mask into the
    # kernel) removes an H*H HBM->VMEM DMA and an H*H VMEM scratch.
    mask = _weight_drop_mask(drop_key, H, dropout, variational, training)
    w_hh_dropped = jnp.asarray(w_hh_raw, jnp.float32) * mask

    # --- lane-dense padding ------------------------------------------------
    mxu_dtype = jnp.dtype(mxu_dtype)
    b_mult = 8 * (4 // mxu_dtype.itemsize)           # 8 for f32, 16 for bf16
    H_p, IN_p, B_p = _round_up(H, 128), _round_up(IN, 128), _round_up(B, b_mult)

    x_p = _pad_to(jnp.asarray(x, jnp.float32), (T, B_p, IN_p)).astype(mxu_dtype)
    w_ih_t = _pad_to(jnp.asarray(w_ih, jnp.float32).T, (IN_p, H_p)).astype(mxu_dtype)
    w_hh_t = _pad_to(w_hh_dropped.T, (H_p, H_p)).astype(mxu_dtype)
    bias = _pad_to((jnp.asarray(b_ih, jnp.float32)
                    + jnp.asarray(b_hh, jnp.float32)).reshape(1, H),
                   (1, H_p))                                      # f32 folded bias

    # --- tiling -------------------------------------------------------------
    if b_blk is None:
        b_blk = B_p if B_p <= 128 else (128 if B_p % 128 == 0 else B_p)
    assert B_p % b_blk == 0
    if t_blk is None:
        t_blk = _pick_t_blk(T, b_blk)
    assert T % t_blk == 0, "T must be divisible by the time block"

    # --- explicit VMEM budget (blocks + single-buffered constants) ----------
    est = (2 * t_blk * b_blk * IN_p * mxu_dtype.itemsize     # x (double-buffered)
           + 2 * t_blk * b_blk * H_p * 4                     # out (double-buffered)
           + IN_p * H_p * mxu_dtype.itemsize                 # W_ih^T (1 buffer)
           + H_p * H_p * mxu_dtype.itemsize                  # dropped W_hh^T (1 buffer)
           + H_p * 4 + b_blk * H_p * 4)                      # bias + h scratch
    vmem_limit = int(min(max(2 * est, 16 * 2**20), 64 * 2**20))   # v7x-safe cap

    grid_spec = pltpu.PrefetchScalarGridSpec(
        num_scalar_prefetch=0,
        grid=(B_p // b_blk, T // t_blk),                    # (batch, time) — time innermost
        in_specs=[
            pl.BlockSpec((t_blk, b_blk, IN_p), lambda bb, tb: (tb, bb, 0)),
            pl.BlockSpec((IN_p, H_p), lambda bb, tb: (0, 0),
                         pipeline_mode=pl.Buffered(1)),      # W_ih^T, constant
            pl.BlockSpec((H_p, H_p), lambda bb, tb: (0, 0),
                         pipeline_mode=pl.Buffered(1)),      # dropped W_hh^T, constant
            pl.BlockSpec((1, H_p), lambda bb, tb: (0, 0),
                         pipeline_mode=pl.Buffered(1)),      # folded bias, constant
        ],
        out_specs=pl.BlockSpec((t_blk, b_blk, H_p), lambda bb, tb: (tb, bb, 0)),
        scratch_shapes=[pltpu.VMEM((b_blk, H_p), jnp.float32)],  # carried hidden state
    )

    out_p = pl.pallas_call(
        _weight_drop_rnn_kernel,
        out_shape=jax.ShapeDtypeStruct((T, B_p, H_p), jnp.float32),
        grid_spec=grid_spec,
        compiler_params=pltpu.CompilerParams(
            dimension_semantics=("parallel", "arbitrary"),   # batch ∥, time = recurrence
            vmem_limit_bytes=vmem_limit),
    )(x_p, w_ih_t, w_hh_t, bias)

    return out_p[:, :B, :H]


# ---------------------------------------------------------------------------
# Pure-JAX reference: WeightDrop(_setweights) + tanh-RNN forward
# ---------------------------------------------------------------------------
def _reference(x, w_ih, w_hh_raw, b_ih, b_hh, mask):
    w_hh_d = w_hh_raw * mask
    T, B, _ = x.shape
    H = w_ih.shape[0]
    h = jnp.zeros((B, H), jnp.float32)
    outs = []
    for t in range(T):
        h = jnp.tanh(x[t] @ w_ih.T + b_ih + h @ w_hh_d.T + b_hh)
        outs.append(h)
    return jnp.stack(outs)


if __name__ == "__main__":
    # Small shapes: seq=8, batch=8, input=32, hidden=32
    T, B, IN, H = 8, 8, 32, 32
    key = jax.random.PRNGKey(0)
    kx, k1, k2, k3, k4, kdrop = jax.random.split(key, 6)

    # PyTorch nn.RNN default init: U(-1/sqrt(H), 1/sqrt(H))
    bound = 1.0 / float(np.sqrt(H))
    x = jax.random.normal(kx, (T, B, IN), dtype=jnp.float32)
    w_ih = jax.random.uniform(k1, (H, IN), minval=-bound, maxval=bound, dtype=jnp.float32)
    w_hh_raw = jax.random.uniform(k2, (H, H), minval=-bound, maxval=bound, dtype=jnp.float32)
    b_ih = jax.random.uniform(k3, (H,), minval=-bound, maxval=bound, dtype=jnp.float32)
    b_hh = jax.random.uniform(k4, (H,), minval=-bound, maxval=bound, dtype=jnp.float32)

    # Reference uses the same once-per-forward dropout mask (same key).
    mask = _weight_drop_mask(kdrop, H, 0.5, False, True)
    ref = _reference(x, w_ih, w_hh_raw, b_ih, b_hh, mask)

    # Default path: bf16 MXU operands, f32 accumulation (loose tolerance).
    out = weight_drop_rnn(x, w_ih, w_hh_raw, b_ih, b_hh, kdrop,
                          dropout=0.5, variational=False, training=True)
    out = jax.block_until_ready(out)
    assert out.shape == (T, B, H) and out.dtype == jnp.float32
    np.testing.assert_allclose(np.asarray(out), np.asarray(ref), rtol=5e-2, atol=5e-2)

    # f32-MXU path: exact-tolerance numerics check against the reference.
    out_f32 = weight_drop_rnn(x, w_ih, w_hh_raw, b_ih, b_hh, kdrop,
                              dropout=0.5, variational=False, training=True,
                              mxu_dtype=jnp.float32)
    out_f32 = jax.block_until_ready(out_f32)
    np.testing.assert_allclose(np.asarray(out_f32), np.asarray(ref), rtol=1e-4, atol=1e-4)

    # Exercise the variational path once as well.
    out_var = weight_drop_rnn(x, w_ih, w_hh_raw, b_ih, b_hh, kdrop,
                              dropout=0.5, variational=True, training=True)
    jax.block_until_ready(out_var)

    print("KERNEL_OK")
</pallas_src>

<mosaic_0001>
module attributes {stable_mosaic.version = 11 : i64} {
  func.func @_weight_drop_rnn_kernel(%arg0: i32, %arg1: i32, %arg2: memref<2x16x128xbf16, #tpu.memory_space<vmem>>, %arg3: memref<128x128xbf16, #tpu.memory_space<vmem>>, %arg4: memref<128x128xbf16, #tpu.memory_space<vmem>>, %arg5: memref<1x128xf32, #tpu.memory_space<vmem>>, %arg6: memref<2x16x128xf32, #tpu.memory_space<vmem>>, %arg7: memref<16x128xf32, #tpu.memory_space<vmem>>) attributes {dimension_semantics = [#tpu.dimension_semantics<parallel>, #tpu.dimension_semantics<arbitrary>], iteration_bounds = array<i64: 1, 4>, scalar_prefetch = 0 : i64, scratch_operands = 1 : i64, tpu.core_type = #tpu.core_type<tc>, window_params = [{transform_indices = @transform_0, window_bounds = array<i64: 2, 16, 128>}, {pipeline_mode = #tpu.pipeline_mode<synchronous>, transform_indices = @transform_1, window_bounds = array<i64: 128, 128>}, {pipeline_mode = #tpu.pipeline_mode<synchronous>, transform_indices = @transform_2, window_bounds = array<i64: 128, 128>}, {pipeline_mode = #tpu.pipeline_mode<synchronous>, transform_indices = @transform_3, window_bounds = array<i64: 1, 128>}, {transform_indices = @transform_4, window_bounds = array<i64: 2, 16, 128>}]} {
    %c0_i32 = arith.constant 0 : i32
    %0 = arith.cmpi eq, %arg1, %c0_i32 : i32
    %1 = arith.extui %0 : i1 to i32
    %c0_i32_0 = arith.constant 0 : i32
    %2 = arith.cmpi ne, %1, %c0_i32_0 : i32
    scf.if %2 {
      %cst_29 = arith.constant 0.000000e+00 : f32
      %38 = vector.broadcast %cst_29 : f32 to vector<16x128xf32>
      %c0_30 = arith.constant 0 : index
      %c0_31 = arith.constant 0 : index
      %39 = vector.load %arg7[%c0_30, %c0_31] : memref<16x128xf32, #tpu.memory_space<vmem>>, vector<16x128xf32>
      tpu.vector_store %arg7[%c0_30, %c0_31], %38 {strides = array<i32>} : memref<16x128xf32, #tpu.memory_space<vmem>>, vector<16x128xf32>,
    } else {
    }
    %c0 = arith.constant 0 : index
    %c0_1 = arith.constant 0 : index
    %c0_2 = arith.constant 0 : index
    %3 = vector.load %arg2[%c0, %c0_1, %c0_2] : memref<2x16x128xbf16, #tpu.memory_space<vmem>>, vector<2x16x128xbf16>
    %4 = vector.shape_cast %3 : vector<2x16x128xbf16> to vector<32x128xbf16>
    %c0_3 = arith.constant 0 : index
    %c0_4 = arith.constant 0 : index
    %5 = vector.load %arg3[%c0_3, %c0_4] : memref<128x128xbf16, #tpu.memory_space<vmem>>, vector<128x128xbf16>
    %cst = arith.constant dense<0.000000e+00> : vector<32x128xf32>
    %6 = tpu.matmul %4, %5, %cst {dimension_numbers = #tpu.dot_dimension_numbers<[1], [0], [0], [1], [0, 0, 1, 1], [], []>} : vector<32x128xbf16>, vector<128x128xbf16>, vector<32x128xf32> -> vector<32x128xf32>
    %c0_5 = arith.constant 0 : index
    %c0_6 = arith.constant 0 : index
    %7 = vector.load %arg5[%c0_5, %c0_6] : memref<1x128xf32, #tpu.memory_space<vmem>>, vector<1x128xf32>
    %8 = vector.broadcast %7 : vector<1x128xf32> to vector<32x128xf32>
    %9 = arith.addf %6, %8 : vector<32x128xf32>
    %10 = vector.shape_cast %9 : vector<32x128xf32> to vector<2x16x128xf32>
    %c0_7 = arith.constant 0 : index
    %c0_8 = arith.constant 0 : index
    %c0_9 = arith.constant 0 : index
    %11 = vector.load %arg6[%c0_7, %c0_8, %c0_9] : memref<2x16x128xf32, #tpu.memory_space<vmem>>, vector<2x16x128xf32>
    tpu.vector_store %arg6[%c0_7, %c0_8, %c0_9], %10 {strides = array<i32>} : memref<2x16x128xf32, #tpu.memory_space<vmem>>, vector<2x16x128xf32>,
    %c0_10 = arith.constant 0 : index
    %c0_11 = arith.constant 0 : index
    %12 = vector.load %arg7[%c0_10, %c0_11] : memref<16x128xf32, #tpu.memory_space<vmem>>, vector<16x128xf32>
    %c0_i32_12 = arith.constant 0 : i32
    %13 = arith.truncf %12 : vector<16x128xf32> to vector<16x128xbf16>
    %c0_13 = arith.constant 0 : index
    %c0_14 = arith.constant 0 : index
    %14 = vector.load %arg4[%c0_13, %c0_14] : memref<128x128xbf16, #tpu.memory_space<vmem>>, vector<128x128xbf16>
    %cst_15 = arith.constant dense<0.000000e+00> : vector<16x128xf32>
    %15 = tpu.matmul %13, %14, %cst_15 {dimension_numbers = #tpu.dot_dimension_numbers<[1], [0], [0], [1], [0, 0, 1, 1], [], []>} : vector<16x128xbf16>, vector<128x128xbf16>, vector<16x128xf32> -> vector<16x128xf32>
    %16 = arith.index_cast %c0_i32_12 : i32 to index
    %c0_16 = arith.constant 0 : index
    %c0_17 = arith.constant 0 : index
    %17 = vector.load %arg6[%16, %c0_16, %c0_17] : memref<2x16x128xf32, #tpu.memory_space<vmem>>, vector<1x16x128xf32>
    %18 = vector.shape_cast %17 : vector<1x16x128xf32> to vector<16x128xf32>
    %19 = arith.addf %18, %15 : vector<16x128xf32>
    %20 = math.tanh %19 : vector<16x128xf32>
    %21 = arith.index_cast %c0_i32_12 : i32 to index
    %c0_18 = arith.constant 0 : index
    %c0_19 = arith.constant 0 : index
    %22 = vector.load %arg6[%21, %c0_18, %c0_19] : memref<2x16x128xf32, #tpu.memory_space<vmem>>, vector<1x16x128xf32>
    %23 = vector.shape_cast %22 : vector<1x16x128xf32> to vector<16x128xf32>
    %24 = vector.shape_cast %20 : vector<16x128xf32> to vector<1x16x128xf32>
    tpu.vector_store %arg6[%21, %c0_18, %c0_19], %24 {strides = array<i32>} : memref<2x16x128xf32, #tpu.memory_space<vmem>>, vector<1x16x128xf32>,
    %c1_i32 = arith.constant 1 : i32
    %25 = arith.truncf %20 : vector<16x128xf32> to vector<16x128xbf16>
    %c0_20 = arith.constant 0 : index
    %c0_21 = arith.constant 0 : index
    %26 = vector.load %arg4[%c0_20, %c0_21] : memref<128x128xbf16, #tpu.memory_space<vmem>>, vector<128x128xbf16>
    %cst_22 = arith.constant dense<0.000000e+00> : vector<16x128xf32>
    %27 = tpu.matmul %25, %26, %cst_22 {dimension_numbers = #tpu.dot_dimension_numbers<[1], [0], [0], [1], [0, 0, 1, 1], [], []>} : vector<16x128xbf16>, vector<128x128xbf16>, vector<16x128xf32> -> vector<16x128xf32>
    %28 = arith.index_cast %c1_i32 : i32 to index
    %c0_23 = arith.constant 0 : index
    %c0_24 = arith.constant 0 : index
    %29 = vector.load %arg6[%28, %c0_23, %c0_24] : memref<2x16x128xf32, #tpu.memory_space<vmem>>, vector<1x16x128xf32>
    %30 = vector.shape_cast %29 : vector<1x16x128xf32> to vector<16x128xf32>
    %31 = arith.addf %30, %27 : vector<16x128xf32>
    %32 = math.tanh %31 : vector<16x128xf32>
    %33 = arith.index_cast %c1_i32 : i32 to index
    %c0_25 = arith.constant 0 : index
    %c0_26 = arith.constant 0 : index
    %34 = vector.load %arg6[%33, %c0_25, %c0_26] : memref<2x16x128xf32, #tpu.memory_space<vmem>>, vector<1x16x128xf32>
    %35 = vector.shape_cast %34 : vector<1x16x128xf32> to vector<16x128xf32>
    %36 = vector.shape_cast %32 : vector<16x128xf32> to vector<1x16x128xf32>
    tpu.vector_store %arg6[%33, %c0_25, %c0_26], %36 {strides = array<i32>} : memref<2x16x128xf32, #tpu.memory_space<vmem>>, vector<1x16x128xf32>,
    %c2_i32 = arith.constant 2 : i32
    %c0_27 = arith.constant 0 : index
    %c0_28 = arith.constant 0 : index
    %37 = vector.load %arg7[%c0_27, %c0_28] : memref<16x128xf32, #tpu.memory_space<vmem>>, vector<16x128xf32>
    tpu.vector_store %arg7[%c0_27, %c0_28], %32 {strides = array<i32>} : memref<16x128xf32, #tpu.memory_space<vmem>>, vector<16x128xf32>,
    return
  }
  func.func @transform_0(%arg0: i32, %arg1: i32) -> (i32, i32, i32) {
    %c0_i32 = arith.constant 0 : i32
    %c0_i32_0 = arith.constant 0 : i32
    return %arg1, %arg0, %c0_i32 : i32, i32, i32
  }
  func.func @transform_1(%arg0: i32, %arg1: i32) -> (i32, i32) {
    %c0_i32 = arith.constant 0 : i32
    %c0_i32_0 = arith.constant 0 : i32
    %c0_i32_1 = arith.constant 0 : i32
    return %c0_i32, %c0_i32_0 : i32, i32
  }
  func.func @transform_2(%arg0: i32, %arg1: i32) -> (i32, i32) {
    %c0_i32 = arith.constant 0 : i32
    %c0_i32_0 = arith.constant 0 : i32
    %c0_i32_1 = arith.constant 0 : i32
    return %c0_i32, %c0_i32_0 : i32, i32
  }
  func.func @transform_3(%arg0: i32, %arg1: i32) -> (i32, i32) {
    %c0_i32 = arith.constant 0 : i32
    %c0_i32_0 = arith.constant 0 : i32
    %c0_i32_1 = arith.constant 0 : i32
    return %c0_i32, %c0_i32_0 : i32, i32
  }
  func.func @transform_4(%arg0: i32, %arg1: i32) -> (i32, i32, i32) {
    %c0_i32 = arith.constant 0 : i32
    %c0_i32_0 = arith.constant 0 : i32
    return %arg1, %arg0, %c0_i32 : i32, i32, i32
  }
}

</mosaic_0001>

<bundles_post_ra>
// kernel: tpu_custom_call.1
= control target key start
LH: loop header
LB: loop body
LE: loop exit
PB: predicated region body
PF: predicated region fallthrough
CT: control target
= control target key end

     0   :  { %9 = vsyncpa [#allocation4], 0  ;;  %s1473_s0 = inlined_call_operand.hbm [shape: bf16[8,16,128], index: 0, kind: input, shape index: {}]   ;;  %s1474_s1 = inlined_call_operand.hbm [shape: bf16[128,128], index: 1, kind: input, shape index: {}]   ;;  %s1475_s2 = inlined_call_operand.hbm [shape: bf16[128,128], index: 2, kind: input, shape index: {}]   ;;  %s1476_s3 = inlined_call_operand.vmem [shape: f32[1,128], index: 3, kind: input, shape index: {}]   ;;  %s1477_s4 = inlined_call_operand.hbm [shape: f32[8,16,128], index: 4, kind: output, shape index: {}]  }
   0x1   :  { %11 = vsyncpa [#allocation4 + $0x1], 0 }
   0x2   :  { %12 = vsyncpa [#allocation7], 0 }
   0x3   :  { %13 = vsyncpa [#allocation5], 0 }
   0x4   :  { %15 = vsyncpa [#allocation5 + $0x1], 0  ;;  %s1242_s15 = smov 0   ;;  %s1244_s16 = smov 0  }
   0x5   :  { %s1246_s17 = smov 0   ;;  %s1248_s18 = smov 0  }
   0x6   :  { %s1250_s19 = smov 0   ;;  %s1252_s20 = smov 0  }
   0x7 LB: > { %s771_s21 = sadd.s32 4294967295, %s1204_s20   ;;  %s772_s22 = sadd.s32 4294967294, %s1204_s20   ;;  %s1204_s20 = sphi %s1252_s20, %s21_s20   ;;  %s1200_s19 = sphi %s1250_s19, %s1495_s19   ;;  %s1196_s18 = sphi %s1248_s18, %s1494_s18   ;;  %s1192_s17 = sphi %s1246_s17, %s1493_s17   ;;  %s1188_s16 = sphi %s1244_s16, %s1492_s16   ;;  %s1184_s15 = sphi %s1242_s15, %s1491_s15  }
   0x8   : > { %p55_p0 = scmp.ne.s32.totalorder %s1188_s16, %s1184_s15  ;;  %p1276_p1 = scmp.eq.s32.totalorder %s771_s21, 0 }
   0x9   : > { %p1280_p2 = scmp.eq.s32.totalorder %s771_s21, 3  ;;  %p150_p3 = scmp.eq.s32.totalorder %s772_s22, 3 }
   0xa   : > { %p1286_p4 = por %p1276_p1, %p55_p0  ;;  %p773_p5 = scmp.ge.s32.totalorder %s1204_s20, 1 }
   0xb   : > { %p1291_p6 = por %p150_p3, %p55_p0  ;;  %p157_p7 = scmp.lt.s32.totalorder %s1204_s20, 5 }
   0xc   : > { %s1206_s28 = smov [#allocation6]   ;;  %s1207_s5 = smov [#allocation8]  }
   0xd   : > { %s1483_s26 = scalar_select %p1291_p6, 1, 0 }
   0xe   : > { %p1296_p8 = pnand %p773_p5, %p157_p7  ;;  %s169_s29 = sshll.u32 %s1206_s28, 4  ;;  %s170_s29 = int_to_ptr.vmem [resolvable:$true] %s169_s29 }
   0xf   : > { %s182_s6 = sshll.u32 %s1207_s5, 4  ;;  %s1051_s7 = scalar_lea.vmem %s170_s29, 1024  ;;  %s183_s6 = int_to_ptr.vmem [resolvable:$true] %s182_s6 }
  0x10   : > { %p928_p9 = pneg %p1296_p8  ;;  %p1052_p12 = scmp.ne.s32.totalorder %s170_s29, %s1051_s7 }
  0x11   : > { %p1059_p3 = scmp.lt.s32.totalorder %s170_s29, %s170_s29  ;;  %p1060_p5 = scmp.lt.s32.totalorder %s1051_s7, %s1051_s7 }
  0x12   : > { %p1304_p10 = pnand %p928_p9, %p1276_p1 }
  0x13   : > { %p1061_p7 = por %p1060_p5, %p1059_p3 }
  0x14   : > { %p1042_p11 = pneg %p1304_p10 }
  0x16   : > { %p1054_p13 = pnand %p1052_p12, %p1042_p11 }
  0x18   : > { %p1055_p0 = pneg %p1054_p13 }
  0x1a   : > { %p1062_p9 = pnand %p1061_p7, %p1055_p0 }
  0x1c   : > { %1065 = shalt.err (!%p1062_p9)
}
  0x1d   : > { %s1478_s8 = smov 64   ;;  %s1479_s9 = smov 4  }
  0x1e   : > { %931 = dma.hbm_to_vmem [thread:$0]  (!%p1304_p10), %s1474_s1, 1024, %s170_s29, [#allocation7], %s1478_s8, %s1478_s8, %s1479_s9  }
  0x1f   : > { %s1077_s12 = scalar_lea.vmem %s183_s6, 1024  ;;  %p1085_p0 = scmp.lt.s32.totalorder %s183_s6, %s183_s6 }
  0x20   : > { %p1078_p12 = scmp.ne.s32.totalorder %s183_s6, %s1077_s12  ;;  %p1086_p5 = scmp.lt.s32.totalorder %s1077_s12, %s1077_s12 }
  0x22   : > { %p1080_p13 = pnand %p1078_p12, %p1042_p11  ;;  %p1087_p7 = por %p1086_p5, %p1085_p0 }
  0x24   : > { %p1081_p3 = pneg %p1080_p13 }
  0x26   : > { %p1088_p9 = pnand %p1087_p7, %p1081_p3 }
  0x28   : > { %1091 = shalt.err (!%p1088_p9)
}
  0x29   : > { %934 = dma.hbm_to_vmem [thread:$0]  (!%p1304_p10), %s1475_s2, 1024, %s183_s6, [#allocation7], %s1478_s8, %s1478_s8, %s1479_s9  }
  0x2a   : > { %s30_s21 = sadd.s32 1, %s1200_s19  ;;  %s42_s22 = sadd.s32 1, %s1192_s17 }
  0x2b   : > { %p31_p11 = scmp.ge.s32.totalorder %s30_s21, 4  ;;  %p49_p12 = scmp.ne.s32.totalorder %s1192_s17, %s1188_s16 }
  0x2c   : > { %p50_p13 = scmp.eq.s32.totalorder %s1204_s20, 0  ;;  %p945_p3 = scmp.lt.s32.totalorder %s1204_s20, 4 }
  0x2d   : > { %s1497_s21 = smov (%p31_p11, %s30_s21), 0  ;;  %p1342_p5 = por %p1280_p2, %p49_p12 }
  0x2e   : > { %p51_p0 = por %p50_p13, %p49_p12  ;;  %s37_s29 = ssub.s32 %s1200_s19, %s1497_s21 }
  0x2f   : > { %s199_s30 = sand.u32 1, %s1192_s17   ;;  %p40_p7 = scmp.eq.s32.totalorder %s37_s29, 0 }
  0x30   : > { %s777_s5 = sshll.u32 %s199_s30, 4  ;;  %s825_s6 = sshll.u32 %s1200_s19, 8 }
  0x31   : > { %s1351_s7 = scalar_select %p40_p7, %s1192_s17, %s42_s22  }
  0x32   : > { %s212_s12 = scalar_lea.hbm %s1473_s0, %s825_s6  ;;  %s203_s13 = scalar_lea.vmem [#allocation3], %s777_s5 }
  0x33   : > { %s213_s14 = sshll.u32 %s203_s13, 4  ;;  %p1358_p10 = pnand %p945_p3, %p51_p0  ;;  %s214_s14 = int_to_ptr.vmem [resolvable:$true] %s213_s14 }
  0x34   : > { %s200_s8 = scalar_lea.sflag [#allocation4], %s199_s30  ;;  %s1105_s29 = scalar_lea.vmem %s214_s14, 256 }
  0x35   : > { %p1094_p2 = pneg %p1358_p10  ;;  %p1106_p9 = scmp.ne.s32.totalorder %s214_s14, %s1105_s29 }
  0x36   : > { %s1210_s22 = smov [#allocation3]  }
  0x37   : > { %p1108_p11 = pnand %p1106_p9, %p1094_p2  ;;  %s1110_s9 = sshll.u32 %s1210_s22, 4  ;;  %s1111_s9 = int_to_ptr.vmem [resolvable:$false] %s1110_s9 }
  0x38   : > { %s1112_s6 = scalar_lea.vmem %s1111_s9, 512  ;;  %p1113_p13 = scmp.lt.s32.totalorder %s214_s14, %s1111_s9 }
  0x39   : > { %p1109_p12 = pneg %p1108_p11  ;;  %p1114_p7 = scmp.lt.s32.totalorder %s1112_s6, %s1105_s29 }
  0x3b   : > { %p1115_p6 = por %p1114_p7, %p1113_p13 }
  0x3d   : > { %p1116_p3 = pnand %p1115_p6, %p1109_p12 }
  0x3f   : > { %1119 = shalt.err (!%p1116_p3)
}
  0x40   : > { %s1488_s5 = smov 4   ;;  %s1489_s10 = smov 64  }
  0x41   : > { %938 = dma.hbm_to_vmem [thread:$0]  (!%p1358_p10), %s212_s12, 256, %s214_s14, %s200_s8, %s1489_s10, %s1489_s10, %s1488_s5  }
  0x42   : > { %225 = sbr.rel (%p1296_p8) target bundleno = 562 (0x232), region = 36  ;;  %s1372_s30 = sand.u32 (!%p1296_p8), 1, %s1188_s16  }
  0x43   : > { %s782_s9 = sshll.u32 (!%p1296_p8), %s1372_s30, 4  ;;  %s228_s11 = scalar_lea.sflag (!%p1296_p8), [#allocation4], %s1372_s30 }
  0x44   : > { %s1376_s13 = scalar_lea.vmem (!%p1296_p8), [#allocation3], %s782_s9 }
  0x47   : > { %1171 = dma.done.wait (%p1286_p4), %s228_s11, 256  }
  0x48   : > { %1173 = vsyncadd (%p1286_p4), %s228_s11, 4294967040 }
  0x49   : > { %1175 = dma.done.wait (%p1276_p1), [#allocation7], 2048  }
  0x4a   : > { %1177 = vsyncadd (%p1276_p1), [#allocation7], 4294965248  ;;  %s785_s27 = sshll.u32 %s1372_s30, 5  ;;  %p786_p6 = scmp.ne.s32.totalorder %s1196_s18, 0 }
  0x4b   : > { %s1387_s8 = scalar_lea.vmem [#allocation9], %s785_s27 }
  0x4c   : > { %272 = sbr.rel (%p786_p6) target bundleno = 83 (0x53), region = 52 }
  0x51   : > { %v1211_v0 = vmov 0.0  }
  0x52   : > { %273 = vst [vmem:[#allocation2] sm:$0xff] %v1211_v0  ;;  %274 = vst [vmem:[#allocation2 + $0x8] sm:$0xff] %v1211_v0 }
  0x53 PF: > { %v1006_v1 = vld [vmem:[#allocation6 + $0x38] sm:$0xff]   ;;  %v1007_v2 = vld [vmem:[#allocation6 + $0x30] sm:$0xff]   ;;  %v1212_v3 = vmov 0.0   ;;  %vm1213_vm0 = vmmov 0   ;;  %v1009_v5 = vld [vmem:[#allocation6 + $0x28] sm:$0xff]   ;;  %s827_s12 = sshll.u32 %s1196_s18, 9 }
  0x54   : > { %876 = vmatprep.subr.bf16.mxu1 %v1212_v3  ;;  %856 = vmatprep.subr.bf16.mxu0 %v1006_v1  ;;  %v1008_v4 = vld [vmem:[#allocation8 + $0x38] sm:$0xff]   ;;  %v1010_v6 = vld [vmem:[#allocation8 + $0x30] sm:$0xff]   ;;  %v1011_v7 = vld [vmem:[#allocation6 + $0x20] sm:$0xff]   ;;  %s665_s14 = sshll.u32 %s1387_s8, 4  ;;  %s1423_s22 = scalar_lea.hbm %s1477_s4, %s827_s12  ;;  %s1425_s14 = int_to_ptr.vmem [resolvable:$true] %s665_s14 }
  0x55   : > { %892 = vmatprep.mubr.msk.bf16.mxu1 %vm1213_vm0, %v1212_v3  ;;  %857 = vmatpush3.bf16.msra.mxu0 %v1006_v1  ;;  %v1012_v8 = vld [vmem:[#allocation8 + $0x28] sm:$0xff]   ;;  %v1013_v9 = vld [vmem:[#allocation6 + $0x18] sm:$0xff]   ;;  %v1014_v10 = vld [vmem:[#allocation8 + $0x20] sm:$0xff]   ;;  %s649_s6 = scalar_lea.sflag [#allocation5], %s1372_s30  ;;  %s1120_s5 = scalar_lea.vmem %s1425_s14, 512 }
  0x56   : > { %858 = vmatprep.subr.bf16.mxu0 %v1007_v2  ;;  %877 = vmatpush3.bf16.msra.mxu1 %v1008_v4  ;;  %v1020_v11 = vld [vmem:[%s1376_s13] sm:$0xff]   ;;  %v1016_v13 = vld [vmem:[#allocation8 + $0x18] sm:$0xff]   ;;  %v1017_v14 = vld [vmem:[#allocation6 + $0x8] sm:$0xff]   ;;  %p1121_p1 = scmp.ne.s32.totalorder %s1425_s14, %s1120_s5  ;;  %s1214_s18 = smov [#allocation9]  }
  0x57   : > { %878 = vmatprep.subr.bf16.mxu1 %v1212_v3  ;;  %v1015_v12 = vld [vmem:[#allocation6 + $0x10] sm:$0xff]   ;;  %872 = vmatprep.mubr.bf16.mxu0 %v1020_v11  ;;  %v1019_v16 = vld [vmem:[#allocation6] sm:$0xff]   ;;  %v1021_v17 = vld [vmem:[#allocation8 + $0x8] sm:$0xff]   ;;  %s1124_s10 = sshll.u32 %s1214_s18, 4  ;;  %s1125_s10 = int_to_ptr.vmem [resolvable:$false] %s1124_s10 }
  0x58   : > { %v1018_v15 = vld [vmem:[#allocation8 + $0x10] sm:$0xff]   ;;  %v1023_v18 = vld [vmem:[#allocation8] sm:$0xff]   ;;  %v1022_v21 = vld [vmem:[%s1376_s13 + $0x8] sm:$0xff]   ;;  %p1122_p4 = pnand %p1121_p1, %p1342_p5  ;;  %s1126_s9 = scalar_lea.vmem %s1125_s10, 1024 }
  0x59   : > { %859 = vmatpush3.bf16.msra.mxu0 %v1007_v2  ;;  %v415_v19 = vld [vmem:[#allocation2] sm:$0xff]  ;;  %v416_v20 = vld [vmem:[#allocation2 + $0x8] sm:$0xff]  ;;  %v1026_v25 = vld [vmem:[#allocation8 + $0x28] sm:$0xff]   ;;  %p1127_p0 = scmp.lt.s32.totalorder %s1425_s14, %s1125_s10  ;;  %p1128_p10 = scmp.lt.s32.totalorder %s1126_s9, %s1120_s5 }
  0x5a   : > { %860 = vmatprep.subr.bf16.mxu0 %v1009_v5  ;;  %879 = vmatpush3.bf16.msra.mxu1 %v1010_v6  ;;  %v417_v22 = vpack.c.bf16 %v416_v20, %v415_v19  ;;  %v1024_v23 = vld [vmem:[#allocation8 + $0x38] sm:$0xff]   ;;  %v1025_v24 = vld [vmem:[#allocation8 + $0x30] sm:$0xff]   ;;  %v1027_v26 = vld [vmem:[#allocation8 + $0x20] sm:$0xff]   ;;  %p1123_p8 = pneg %p1122_p4 }
  0x5b   : > { %880 = vmatprep.subr.bf16.mxu1 %v1212_v3  ;;  %v1028_v27 = vld [vmem:[#allocation8 + $0x18] sm:$0xff]   ;;  %v1029_v28 = vld [vmem:[#allocation8 + $0x10] sm:$0xff]   ;;  %v1030_v29 = vld [vmem:[#allocation8 + $0x8] sm:$0xff]   ;;  %p1129_p2 = por %p1128_p10, %p1127_p0 }
  0x5c   : > { %v1031_v30 = vld [vmem:[#allocation8] sm:$0xff]   ;;  %v787_v31 = vld [vmem:[%s1476_s3] ss:$0 sm:$0xff] }
  0x5d   : > { %861 = vmatpush3.bf16.msra.mxu0 %v1009_v5  ;;  %p1130_p9 = pnand %p1129_p2, %p1123_p8 }
  0x5e   : > { %862 = vmatprep.subr.bf16.mxu0 %v1011_v7  ;;  %881 = vmatpush3.bf16.msra.mxu1 %v1012_v8 }
  0x5f   : > { %882 = vmatprep.subr.bf16.mxu1 %v1212_v3 }
  0x61   : > { %863 = vmatpush3.bf16.msra.mxu0 %v1011_v7 }
  0x62   : > { %864 = vmatprep.subr.bf16.mxu0 %v1013_v9  ;;  %883 = vmatpush3.bf16.msra.mxu1 %v1014_v10 }
  0x63   : > { %884 = vmatprep.subr.bf16.mxu1 %v1212_v3 }
  0x65   : > { %865 = vmatpush3.bf16.msra.mxu0 %v1013_v9 }
  0x66   : > { %866 = vmatprep.subr.bf16.mxu0 %v1015_v12  ;;  %885 = vmatpush3.bf16.msra.mxu1 %v1016_v13 }
  0x67   : > { %886 = vmatprep.subr.bf16.mxu1 %v1212_v3 }
  0x69   : > { %867 = vmatpush3.bf16.msra.mxu0 %v1015_v12 }
  0x6a   : > { %868 = vmatprep.subr.bf16.mxu0 %v1017_v14  ;;  %887 = vmatpush3.bf16.msra.mxu1 %v1018_v15 }
  0x6b   : > { %888 = vmatprep.subr.bf16.mxu1 %v1212_v3 }
  0x6d   : > { %869 = vmatpush3.bf16.msra.mxu0 %v1017_v14 }
  0x6e   : > { %870 = vmatprep.subr.bf16.mxu0 %v1019_v16  ;;  %889 = vmatpush3.bf16.msra.mxu1 %v1021_v17 }
  0x6f   : > { %890 = vmatprep.subr.bf16.mxu1 %v1212_v3 }
  0x71   : > { %871 = vmatpush3.bf16.msra.mxu0 %v1019_v16 }
  0x72   : > { %891 = vmatpush3.bf16.msra.mxu1 %v1023_v18  ;;  %896 = vmatprep.subr.bf16.mxu0 %v1212_v3 }
  0x74   : > { %873 = vmatmul.mubr.bf16.vlgmr.msra.gmra.mxu0 %v1022_v21 }
  0x75   : > { %893 = vmatmul.mubr.bf16.vlgmr.msra.gmra.mxu1 %v417_v22  ;;  %912 = vmatprep.mubr.msk.bf16.mxu0 %vm1213_vm0, %v1212_v3 }
  0x76   : > { %897 = vmatpush3.bf16.msra.mxu0 %v1024_v23 }
  0x77   : > { %898 = vmatprep.subr.bf16.mxu0 %v1212_v3 }
  0x7a   : > { %899 = vmatpush3.bf16.msra.mxu0 %v1025_v24 }
  0x7b   : > { %900 = vmatprep.subr.bf16.mxu0 %v1212_v3 }
  0x7e   : > { %901 = vmatpush3.bf16.msra.mxu0 %v1026_v25 }
  0x7f   : > { %902 = vmatprep.subr.bf16.mxu0 %v1212_v3 }
  0x82   : > { %903 = vmatpush3.bf16.msra.mxu0 %v1027_v26 }
  0x83   : > { %904 = vmatprep.subr.bf16.mxu0 %v1212_v3 }
  0x86   : > { %905 = vmatpush3.bf16.msra.mxu0 %v1028_v27 }
  0x87   : > { %906 = vmatprep.subr.bf16.mxu0 %v1212_v3 }
  0x8a   : > { %907 = vmatpush3.bf16.msra.mxu0 %v1029_v28 }
  0x8b   : > { %908 = vmatprep.subr.bf16.mxu0 %v1212_v3 }
  0x8e   : > { %909 = vmatpush3.bf16.msra.mxu0 %v1030_v29 }
  0x8f   : > { %910 = vmatprep.subr.bf16.mxu0 %v1212_v3 }
  0x92   : > { %911 = vmatpush3.bf16.msra.mxu0 %v1031_v30 }
 0x134   : > { %v874_v32 = vpop.f32.mrf.mxu0 }
 0x135   : > { %v405_v33 = vadd.f32 %v874_v32, %v787_v31  ;;  %v516_v34 = vpop.f32.mrf.mxu1 }
 0x136   : > { %v396_v35 = vpop.f32.mrf.mxu0 }
 0x137   : > { %v397_v36 = vadd.f32 %v787_v31, %v396_v35  ;;  %v894_v37 = vpop.f32.mrf.mxu1 }
 0x138   : > { %v875_v38 = vpop.f32.mrf.mxu0 }
 0x139   : > { %v408_v39 = vadd.f32 %v875_v38, %v787_v31  ;;  %v525_v40 = vadd.f32 %v516_v34, %v397_v36  ;;  %v519_v41 = vpop.f32.mrf.mxu1 }
 0x13a   : > { %v399_v42 = vpop.f32.mrf.mxu0 }
 0x13b   : > { %v400_v43 = vadd.f32 %v787_v31, %v399_v42  ;;  %1032 = vtanh.f32 %v525_v40  ;;  %v895_v44 = vpop.f32.mrf.mxu1 }
 0x13d   : > { %v526_v45 = vadd.f32 %v519_v41, %v400_v43 }
 0x13f   : > { %1034 = vtanh.f32 %v526_v45 }
 0x148   : > { %v1033_v46 = vpop.eup %1032 }
 0x149   : > { %529 = vst [vmem:[%s1387_s8] sm:$0xff] %v1033_v46 }
 0x14c   : > { %v1035_v47 = vpop.eup %1034 }
 0x14d   : > { %530 = vst [vmem:[%s1387_s8 + $0x8] sm:$0xff] %v1035_v47  ;;  %v531_v48 = vpack.c.bf16 %v1035_v47, %v1033_v46 }
 0x14f   : > { %913 = vmatmul.mubr.bf16.vlgmr.msra.gmra.mxu0 %v531_v48 }
 0x20f   : > { %v630_v49 = vpop.f32.mrf.mxu0 }
 0x210   : > { %v640_v50 = vadd.f32 %v630_v49, %v405_v33 }
 0x211   : > { %v914_v51 = vpop.f32.mrf.mxu0 }
 0x212   : > { %1036 = vtanh.f32 %v640_v50 }
 0x213   : > { %v633_v52 = vpop.f32.mrf.mxu0 }
 0x214   : > { %v641_v53 = vadd.f32 %v633_v52, %v408_v39 }
 0x215   : > { %v915_v54 = vpop.f32.mrf.mxu0 }
 0x216   : > { %1038 = vtanh.f32 %v641_v53 }
 0x21f   : > { %v1037_v55 = vpop.eup %1036 }
 0x220   : > { %816 = vst [vmem:[%s1387_s8 + $0x10] sm:$0xff] %v1037_v55  ;;  %646 = vst [vmem:[#allocation2] sm:$0xff] %v1037_v55 }
 0x223   : > { %v1039_v56 = vpop.eup %1038 }
 0x224   : > { %817 = vst [vmem:[%s1387_s8 + $0x18] sm:$0xff] %v1039_v56  ;;  %647 = vst [vmem:[#allocation2 + $0x8] sm:$0xff] %v1039_v56 }
 0x225   : > { %1133 = shalt.err (!%p1130_p9)
}
 0x226   : > { %s1134_s11 = scalar_lea.hbm %s1423_s22, 512  ;;  %s1138_s8 = scalar_lea.hbm %s1477_s4, 2048 }
 0x227   : > { %p1135_p11 = scmp.ne.s32.totalorder %s1423_s22, %s1134_s11  ;;  %p1139_p7 = scmp.lt.s32.totalorder %s1423_s22, %s1477_s4 }
 0x228   : > { %p1140_p3 = scmp.lt.s32.totalorder %s1138_s8, %s1134_s11 }
 0x229   : > { %p1136_p12 = pnand %p1135_p11, %p1342_p5 }
 0x22a   : > { %p1141_p6 = por %p1140_p3, %p1139_p7 }
 0x22b   : > { %p1137_p13 = pneg %p1136_p12 }
 0x22d   : > { %p1142_p1 = pnand %p1141_p6, %p1137_p13 }
 0x22f   : > { %1145 = shalt.err (!%p1142_p1)
}
 0x230   : > { %s1215_s12 = smov 128   ;;  %s1216_s24 = smov 8  }
 0x231   : > { %926 = dma.vmem_to_hbm [thread:$0]  (%p1342_p5), %s1425_s14, 512, %s1423_s22, %s649_s6, %s1215_s12, %s1215_s12, %s1216_s24  }
 0x232 PF: > { %p948_p4 = scmp.ge.s32.totalorder %s1204_s20, 2  ;;  %s680_s29 = sand.u32 1, %s1184_s15  }
 0x233   : > { %p1490_p8 = scmp.ne.s32.totalorder %s1483_s26, 0  ;;  %s681_s5 = scalar_lea.sflag [#allocation5], %s680_s29 }
 0x235   : > { %p940_p0 = pnand %p948_p4, %p1490_p8 }
 0x237   : > { %p941_p10 = pneg %p940_p0 }
 0x239   : > { %1179 = dma.done.wait (%p941_p10), %s681_s5, 512  }
 0x23a   : > { %1181 = vsyncadd (%p941_p10), %s681_s5, 4294966784  ;;  %s21_s20 = sadd.s32 1, %s1204_s20   ;;  %s1491_s15 = smov %s1188_s16 }
 0x23b   : > { %p18_p2 = scmp.ge.s32.totalorder %s21_s20, 6   ;;  %s1492_s16 = smov %s1192_s17 }
 0x23c   : > { %s1493_s17 = smov %s1351_s7  ;;  %s1494_s18 = smov %s1200_s19 }
 0x23d   : > { %s1495_s19 = smov %s1497_s21  ;;  %20 = sbr.rel (!%p18_p2) target bundleno = 7 (0x7), region = 94 }
 0x242   :  { %686 = vsyncpa [#allocation4], 1 }
 0x243   :  { %688 = vsyncpa [#allocation4 + $0x1], 1 }
 0x244   :  { %689 = vsyncpa [#allocation7], 1 }
 0x245   :  { %690 = vsyncpa [#allocation5], 1 }
 0x246   :  { %692 = vsyncpa [#allocation5 + $0x1], 1 }

</bundles_post_ra>
